<compile_context>
chip_gen: v7x
topology: tpu7x:2x2x1
jax: 0.10.0
libtpu: 0.0.40
codegen_flags: <defaults>
</compile_context>

<pallas_src>
import functools

import jax
import jax.numpy as jnp
from jax import lax
from jax.experimental import pallas as pl
from jax.experimental.pallas import tpu as pltpu

_EPS = 1e-12           # matches torch.nn.functional.normalize default eps
_DEFAULT_TILE_M = 512  # negatives-axis tile (multiple of 8; D stays whole on lanes)


def _l2_normalize(x):
    # F.normalize(x, dim=-1): x / max(||x||_2, eps) == x * rsqrt(max(||x||^2, eps^2))
    # rsqrt lowers to the EUP (its own VLIW slot) instead of a VALU divide pass.
    sumsq = jnp.sum(x * x, axis=-1, keepdims=True)
    return x * lax.rsqrt(jnp.maximum(sumsq, _EPS * _EPS))


def _infonce_unpaired_kernel(q_ref, p_ref, n_ref, out_ref,
                             qn_scr, pos_scr, m_scr, s_scr,
                             *, temperature, num_neg, tile_m, mxu_dtype):
    """negative_keys provided, negative_mode='unpaired', reduction='mean'.

    Grid axis 0 walks M-tiles of the negatives; online logsumexp in scratch.
    """
    k = pl.program_id(0)
    last = pl.num_programs(0) - 1

    @pl.when(k == 0)
    def _init():
        q = q_ref[...].astype(jnp.float32)                   # (N, D)
        p = p_ref[...].astype(jnp.float32)                   # (N, D)
        qn = _l2_normalize(q)
        pn = _l2_normalize(p)
        inv_t = jnp.float32(1.0 / temperature)
        # Fold temperature into the (N, D) query once instead of scaling the
        # (N, M) logits on every tile.
        qn_scaled = qn * inv_t
        pos = jnp.sum(qn_scaled * pn, axis=-1, keepdims=True)  # (N, 1) scaled
        qn_scr[...] = qn_scaled.astype(qn_scr.dtype)
        pos_scr[...] = pos
        # Seed the running logsumexp state with the positive logit.
        m_scr[...] = pos
        s_scr[...] = jnp.ones_like(pos)

    # ---- this M-tile of negatives ----
    nk = n_ref[...].astype(jnp.float32)                      # (TM, D), f32 elementwise
    nn_ = _l2_normalize(nk)

    # (N, TM) = qn_scaled @ nn_^T, contracting on D directly (no XLU transpose).
    neg = lax.dot_general(
        qn_scr[...], nn_.astype(mxu_dtype),
        dimension_numbers=(((1,), (1,)), ((), ())),
        preferred_element_type=jnp.float32)

    # Mask out-of-range columns of a ragged last tile.
    col = k * tile_m + lax.broadcasted_iota(jnp.int32, neg.shape, 1)
    neg = jnp.where(col < num_neg, neg, -jnp.inf)

    # Online logsumexp update.
    m_prev = m_scr[...]
    m_new = jnp.maximum(m_prev, jnp.max(neg, axis=-1, keepdims=True))
    alpha = jnp.exp(m_prev - m_new)
    s_scr[...] = alpha * s_scr[...] + jnp.sum(jnp.exp(neg - m_new),
                                              axis=-1, keepdims=True)
    m_scr[...] = m_new

    @pl.when(k == last)
    def _finalize():
        lse = m_scr[...] + jnp.log(s_scr[...])                # (N, 1)
        per_sample = lse - pos_scr[...]                       # CE with label 0
        out_ref[0, 0] = jnp.sum(per_sample) / per_sample.shape[0]  # mean reduction


def _infonce_noneg_kernel(q_ref, p_ref, out_ref, *, temperature, mxu_dtype):
    """negative_keys is None: logits = q @ p^T, labels = arange(N), mean CE.

    N is the batch size, so the (N, N) logits comfortably fit VMEM.
    """
    q = q_ref[...].astype(jnp.float32)
    p = p_ref[...].astype(jnp.float32)
    qn = _l2_normalize(q)
    pn = _l2_normalize(p)

    inv_t = jnp.float32(1.0 / temperature)
    qn_s = qn * inv_t

    # Diagonal (positive) logit directly: row-wise dot product (no iota masks).
    pos = jnp.sum(qn_s * pn, axis=-1, keepdims=True)          # (N, 1)

    # (N, N) logits, contraction on D (no explicit transpose).
    logits = lax.dot_general(
        qn_s.astype(mxu_dtype), pn.astype(mxu_dtype),
        dimension_numbers=(((1,), (1,)), ((), ())),
        preferred_element_type=jnp.float32)

    m = jnp.max(logits, axis=-1, keepdims=True)
    lse = m + jnp.log(jnp.sum(jnp.exp(logits - m), axis=-1, keepdims=True))
    per_sample = lse - pos
    out_ref[0, 0] = jnp.sum(per_sample) / per_sample.shape[0]


def info_nce_pallas(query, positive_key, negative_keys=None, temperature=0.1,
                    tile_m=None):
    """InfoNCE forward (reduction='mean', negative_mode='unpaired',
    symmetric_loss=False). Returns a scalar float32 loss."""
    assert query.ndim == 2 and positive_key.ndim == 2
    assert query.shape == positive_key.shape

    n, d = query.shape
    # bf16 inputs feed the MXU in bf16 (f32 accumulation); otherwise f32.
    mxu_dtype = jnp.bfloat16 if query.dtype == jnp.bfloat16 else jnp.float32

    out_shape = jax.ShapeDtypeStruct((1, 1), jnp.float32)
    smem_out = pl.BlockSpec(memory_space=pltpu.MemorySpace.SMEM)
    vmem_spec = pl.BlockSpec(memory_space=pltpu.MemorySpace.VMEM)

    if negative_keys is not None:
        assert negative_keys.ndim == 2
        assert negative_keys.shape[-1] == d
        m = negative_keys.shape[0]

        if tile_m is None:
            tile_m = min(_DEFAULT_TILE_M, m)
        tile_m = min(tile_m, m)
        assert tile_m == m or tile_m % 8 == 0, "tile_m must be a multiple of 8"
        num_tiles = pl.cdiv(m, tile_m)

        kernel = functools.partial(
            _infonce_unpaired_kernel, temperature=float(temperature),
            num_neg=m, tile_m=tile_m, mxu_dtype=mxu_dtype)

        in_itemsize = jnp.dtype(query.dtype).itemsize
        cost = pl.CostEstimate(
            flops=2 * n * m * d + 6 * (n + m) * d,
            transcendentals=n * m + 2 * n + m,
            bytes_accessed=(2 * n * d + m * d) * in_itemsize + 4)

        mxu_itemsize = jnp.dtype(mxu_dtype).itemsize
        vmem_est = (2 * 2 * n * d * in_itemsize     # q, p blocks (double-buffered)
                    + 2 * tile_m * d * in_itemsize  # negatives tile, double-buffered
                    + n * d * mxu_itemsize          # cached scaled query
                    + 3 * n * 4                     # pos / m / sumexp scratch
                    + 2 * n * tile_m * 4)           # logits + exp intermediates
        vmem_limit = int(min(max(2 * vmem_est, 16 * 1024 * 1024),
                             64 * 1024 * 1024))

        loss = pl.pallas_call(
            kernel,
            out_shape=out_shape,
            grid_spec=pltpu.PrefetchScalarGridSpec(
                num_scalar_prefetch=0,
                grid=(num_tiles,),
                in_specs=[
                    pl.BlockSpec((n, d), lambda k: (0, 0)),        # query (resident)
                    pl.BlockSpec((n, d), lambda k: (0, 0)),        # positive (resident)
                    pl.BlockSpec((tile_m, d), lambda k: (k, 0)),   # negatives M-tile
                ],
                out_specs=smem_out,
                scratch_shapes=[
                    pltpu.VMEM((n, d), mxu_dtype),    # temperature-scaled normalized q
                    pltpu.VMEM((n, 1), jnp.float32),  # positive logit
                    pltpu.VMEM((n, 1), jnp.float32),  # running max
                    pltpu.VMEM((n, 1), jnp.float32),  # running sum-exp
                ],
            ),
            compiler_params=pltpu.CompilerParams(
                dimension_semantics=("arbitrary",),  # M axis is a reduction
                vmem_limit_bytes=vmem_limit),
            cost_estimate=cost,
        )(query, positive_key, negative_keys)
        # TODO(synk): also tile the batch axis N (marked "parallel" for v7x
        # megacore) for very large batches; N is batch-sized here so it stays
        # resident.
    else:
        kernel = functools.partial(_infonce_noneg_kernel,
                                   temperature=float(temperature),
                                   mxu_dtype=mxu_dtype)
        in_itemsize = jnp.dtype(query.dtype).itemsize
        vmem_est = 2 * 2 * n * d * in_itemsize + n * d * 4 + 2 * n * n * 4
        vmem_limit = int(min(max(2 * vmem_est, 16 * 1024 * 1024),
                             64 * 1024 * 1024))
        cost = pl.CostEstimate(
            flops=2 * n * n * d + 8 * n * d,
            transcendentals=n * n + 2 * n,
            bytes_accessed=2 * n * d * in_itemsize + 4)
        loss = pl.pallas_call(
            kernel,
            out_shape=out_shape,
            in_specs=[vmem_spec, vmem_spec],
            out_specs=smem_out,
            compiler_params=pltpu.CompilerParams(vmem_limit_bytes=vmem_limit),
            cost_estimate=cost,
        )(query, positive_key)

    return loss[0, 0]


def _reference_info_nce(query, positive_key, negative_keys=None, temperature=0.1):
    """Pure-JAX reference mirroring the PyTorch code (for verification)."""
    def norm(x):
        nrm = jnp.sqrt(jnp.sum(x * x, axis=-1, keepdims=True))
        return x / jnp.maximum(nrm, _EPS)

    qn = norm(query.astype(jnp.float32))
    pn = norm(positive_key.astype(jnp.float32))
    if negative_keys is not None:
        nn_ = norm(negative_keys.astype(jnp.float32))
        pos = jnp.sum(qn * pn, axis=1, keepdims=True)
        neg = qn @ nn_.T
        logits = jnp.concatenate([pos, neg], axis=1) / temperature
        labels = jnp.zeros((logits.shape[0],), dtype=jnp.int32)
    else:
        logits = (qn @ pn.T) / temperature
        labels = jnp.arange(logits.shape[0])
    logp = jax.nn.log_softmax(logits, axis=1)
    return -jnp.mean(jnp.take_along_axis(logp, labels[:, None], axis=1))


if __name__ == "__main__":
    key = jax.random.PRNGKey(0)
    k1, k2, k3, k4 = jax.random.split(key, 4)

    batch_size, num_negative, embedding_size = 8, 16, 32
    query = jax.random.normal(k1, (batch_size, embedding_size), dtype=jnp.float32)
    positive_key = jax.random.normal(k2, (batch_size, embedding_size), dtype=jnp.float32)
    negative_keys = jax.random.normal(k3, (num_negative, embedding_size), dtype=jnp.float32)

    # 1) unpaired negatives, single tile (docstring example path)
    loss_neg = info_nce_pallas(query, positive_key, negative_keys)
    jax.block_until_ready(loss_neg)
    ref_neg = _reference_info_nce(query, positive_key, negative_keys)
    assert jnp.allclose(loss_neg, ref_neg, atol=1e-5, rtol=1e-4), (loss_neg, ref_neg)

    # 2) unpaired negatives, forced multi-tile grid with a ragged last tile
    #    (exercises the online-logsumexp accumulator and the column mask)
    negative_keys2 = jax.random.normal(k4, (20, embedding_size), dtype=jnp.float32)
    loss_tiled = info_nce_pallas(query, positive_key, negative_keys2, tile_m=8)
    jax.block_until_ready(loss_tiled)
    ref_tiled = _reference_info_nce(query, positive_key, negative_keys2)
    assert jnp.allclose(loss_tiled, ref_tiled, atol=1e-5, rtol=1e-4), (loss_tiled, ref_tiled)

    # 3) no-negatives path (labels = arange(N))
    loss_nn = info_nce_pallas(query, positive_key, None)
    jax.block_until_ready(loss_nn)
    ref_nn = _reference_info_nce(query, positive_key, None)
    assert jnp.allclose(loss_nn, ref_nn, atol=1e-5, rtol=1e-4), (loss_nn, ref_nn)

    # TODO(synk): negative_mode='paired' (3-D negatives), symmetric_loss=True and
    # learn_temperature=True branches are not exercised by the module defaults
    # and are not implemented.
    print("KERNEL_OK")
</pallas_src>

<mosaic_0001>
module attributes {stable_mosaic.version = 11 : i64} {
  func.func @_infonce_unpaired_kernel(%arg0: i32, %arg1: memref<8x32xf32, #tpu.memory_space<vmem>>, %arg2: memref<8x32xf32, #tpu.memory_space<vmem>>, %arg3: memref<16x32xf32, #tpu.memory_space<vmem>>, %arg4: memref<1x1xf32, #tpu.memory_space<smem>>, %arg5: memref<8x32xf32, #tpu.memory_space<vmem>>, %arg6: memref<8x1xf32, #tpu.memory_space<vmem>>, %arg7: memref<8x1xf32, #tpu.memory_space<vmem>>, %arg8: memref<8x1xf32, #tpu.memory_space<vmem>>) attributes {dimension_semantics = [#tpu.dimension_semantics<arbitrary>], iteration_bounds = array<i64: 1>, scalar_prefetch = 0 : i64, scratch_operands = 4 : i64, tpu.core_type = #tpu.core_type<tc>, window_params = [{pipeline_mode = #tpu.pipeline_mode<synchronous>, transform_indices = @transform_0, window_bounds = array<i64: 8, 32>}, {pipeline_mode = #tpu.pipeline_mode<synchronous>, transform_indices = @transform_1, window_bounds = array<i64: 8, 32>}, {transform_indices = @transform_2, window_bounds = array<i64: 16, 32>}, {transform_indices = @transform_3, window_bounds = array<i64: 1, 1>}]} {
    %c0_i32 = arith.constant 0 : i32
    %0 = arith.cmpi eq, %arg0, %c0_i32 : i32
    %1 = arith.extui %0 : i1 to i32
    %c0_i32_0 = arith.constant 0 : i32
    %2 = arith.cmpi ne, %1, %c0_i32_0 : i32
    scf.if %2 {
      %c0_20 = arith.constant 0 : index
      %c0_21 = arith.constant 0 : index
      %41 = vector.load %arg1[%c0_20, %c0_21] : memref<8x32xf32, #tpu.memory_space<vmem>>, vector<8x32xf32>
      %c0_22 = arith.constant 0 : index
      %c0_23 = arith.constant 0 : index
      %42 = vector.load %arg2[%c0_22, %c0_23] : memref<8x32xf32, #tpu.memory_space<vmem>>, vector<8x32xf32>
      %43 = arith.mulf %41, %41 : vector<8x32xf32>
      %cst_24 = arith.constant dense<0.000000e+00> : vector<8xf32>
      %44 = vector.multi_reduction <add>, %43, %cst_24 [1] : vector<8x32xf32> to vector<8xf32>
      %45 = vector.shape_cast %44 : vector<8xf32> to vector<8x1xf32>
      %cst_25 = arith.constant 1.000000e-24 : f32
      %46 = vector.broadcast %cst_25 : f32 to vector<8x1xf32>
      %47 = arith.maximumf %45, %46 : vector<8x1xf32>
      %48 = math.rsqrt %47 : vector<8x1xf32>
      %49 = vector.broadcast %48 : vector<8x1xf32> to vector<8x32xf32>
      %50 = arith.mulf %41, %49 : vector<8x32xf32>
      %51 = arith.mulf %42, %42 : vector<8x32xf32>
      %cst_26 = arith.constant dense<0.000000e+00> : vector<8xf32>
      %52 = vector.multi_reduction <add>, %51, %cst_26 [1] : vector<8x32xf32> to vector<8xf32>
      %53 = vector.shape_cast %52 : vector<8xf32> to vector<8x1xf32>
      %cst_27 = arith.constant 1.000000e-24 : f32
      %54 = vector.broadcast %cst_27 : f32 to vector<8x1xf32>
      %55 = arith.maximumf %53, %54 : vector<8x1xf32>
      %56 = math.rsqrt %55 : vector<8x1xf32>
      %57 = vector.broadcast %56 : vector<8x1xf32> to vector<8x32xf32>
      %58 = arith.mulf %42, %57 : vector<8x32xf32>
      %cst_28 = arith.constant 1.000000e+01 : f32
      %59 = vector.broadcast %cst_28 : f32 to vector<8x32xf32>
      %60 = arith.mulf %50, %59 : vector<8x32xf32>
      %61 = arith.mulf %60, %58 : vector<8x32xf32>
      %cst_29 = arith.constant dense<0.000000e+00> : vector<8xf32>
      %62 = vector.multi_reduction <add>, %61, %cst_29 [1] : vector<8x32xf32> to vector<8xf32>
      %63 = vector.shape_cast %62 : vector<8xf32> to vector<8x1xf32>
      %c0_30 = arith.constant 0 : index
      %c0_31 = arith.constant 0 : index
      %64 = vector.load %arg5[%c0_30, %c0_31] : memref<8x32xf32, #tpu.memory_space<vmem>>, vector<8x32xf32>
      tpu.vector_store %arg5[%c0_30, %c0_31], %60 {strides = array<i32>} : memref<8x32xf32, #tpu.memory_space<vmem>>, vector<8x32xf32>,
      %c0_32 = arith.constant 0 : index
      %c0_33 = arith.constant 0 : index
      %65 = vector.load %arg6[%c0_32, %c0_33] : memref<8x1xf32, #tpu.memory_space<vmem>>, vector<8x1xf32>
      tpu.vector_store %arg6[%c0_32, %c0_33], %63 {strides = array<i32>} : memref<8x1xf32, #tpu.memory_space<vmem>>, vector<8x1xf32>,
      %c0_34 = arith.constant 0 : index
      %c0_35 = arith.constant 0 : index
      %66 = vector.load %arg7[%c0_34, %c0_35] : memref<8x1xf32, #tpu.memory_space<vmem>>, vector<8x1xf32>
      tpu.vector_store %arg7[%c0_34, %c0_35], %63 {strides = array<i32>} : memref<8x1xf32, #tpu.memory_space<vmem>>, vector<8x1xf32>,
      %cst_36 = arith.constant 1.000000e+00 : f32
      %67 = vector.broadcast %cst_36 : f32 to vector<8x1xf32>
      %c0_37 = arith.constant 0 : index
      %c0_38 = arith.constant 0 : index
      %68 = vector.load %arg8[%c0_37, %c0_38] : memref<8x1xf32, #tpu.memory_space<vmem>>, vector<8x1xf32>
      tpu.vector_store %arg8[%c0_37, %c0_38], %67 {strides = array<i32>} : memref<8x1xf32, #tpu.memory_space<vmem>>, vector<8x1xf32>,
    } else {
    }
    %c0 = arith.constant 0 : index
    %c0_1 = arith.constant 0 : index
    %3 = vector.load %arg3[%c0, %c0_1] : memref<16x32xf32, #tpu.memory_space<vmem>>, vector<16x32xf32>
    %4 = arith.mulf %3, %3 : vector<16x32xf32>
    %cst = arith.constant dense<0.000000e+00> : vector<16xf32>
    %5 = vector.multi_reduction <add>, %4, %cst [1] : vector<16x32xf32> to vector<16xf32>
    %6 = vector.shape_cast %5 : vector<16xf32> to vector<16x1xf32>
    %cst_2 = arith.constant 1.000000e-24 : f32
    %7 = vector.broadcast %cst_2 : f32 to vector<16x1xf32>
    %8 = arith.maximumf %6, %7 : vector<16x1xf32>
    %9 = math.rsqrt %8 : vector<16x1xf32>
    %10 = vector.broadcast %9 : vector<16x1xf32> to vector<16x32xf32>
    %11 = arith.mulf %3, %10 : vector<16x32xf32>
    %c0_3 = arith.constant 0 : index
    %c0_4 = arith.constant 0 : index
    %12 = vector.load %arg5[%c0_3, %c0_4] : memref<8x32xf32, #tpu.memory_space<vmem>>, vector<8x32xf32>
    %cst_5 = arith.constant dense<0.000000e+00> : vector<8x16xf32>
    %13 = tpu.matmul %12, %11, %cst_5 {dimension_numbers = #tpu.dot_dimension_numbers<[1], [1], [0], [0], [0, 0, 1, 0], [], []>} : vector<8x32xf32>, vector<16x32xf32>, vector<8x16xf32> -> vector<8x16xf32>
    %c16_i32 = arith.constant 16 : i32
    %14 = arith.muli %arg0, %c16_i32 : i32
    %15 = tpu.iota {dimensions = array<i32: 1>} : vector<8x16xi32>
    %16 = vector.broadcast %14 : i32 to vector<8x16xi32>
    %17 = arith.addi %16, %15 : vector<8x16xi32>
    %c16_i32_6 = arith.constant 16 : i32
    %18 = vector.broadcast %c16_i32_6 : i32 to vector<8x16xi32>
    %19 = arith.cmpi slt, %17, %18 : vector<8x16xi32>
    %cst_7 = arith.constant 0xFF800000 : f32
    %20 = vector.broadcast %cst_7 : f32 to vector<8x16xf32>
    %21 = arith.select %19, %13, %20 : vector<8x16xi1>, vector<8x16xf32>
    %c0_8 = arith.constant 0 : index
    %c0_9 = arith.constant 0 : index
    %22 = vector.load %arg7[%c0_8, %c0_9] : memref<8x1xf32, #tpu.memory_space<vmem>>, vector<8x1xf32>
    %cst_10 = arith.constant dense<0xFF800000> : vector<8xf32>
    %23 = vector.multi_reduction <maximumf>, %21, %cst_10 [1] : vector<8x16xf32> to vector<8xf32>
    %24 = vector.shape_cast %23 : vector<8xf32> to vector<8x1xf32>
    %25 = arith.maximumf %22, %24 : vector<8x1xf32>
    %26 = arith.subf %22, %25 : vector<8x1xf32>
    %27 = math.exp %26 : vector<8x1xf32>
    %c0_11 = arith.constant 0 : index
    %c0_12 = arith.constant 0 : index
    %28 = vector.load %arg8[%c0_11, %c0_12] : memref<8x1xf32, #tpu.memory_space<vmem>>, vector<8x1xf32>
    %29 = arith.mulf %27, %28 : vector<8x1xf32>
    %30 = vector.broadcast %25 : vector<8x1xf32> to vector<8x16xf32>
    %31 = arith.subf %21, %30 : vector<8x16xf32>
    %32 = math.exp %31 : vector<8x16xf32>
    %cst_13 = arith.constant dense<0.000000e+00> : vector<8xf32>
    %33 = vector.multi_reduction <add>, %32, %cst_13 [1] : vector<8x16xf32> to vector<8xf32>
    %34 = vector.shape_cast %33 : vector<8xf32> to vector<8x1xf32>
    %35 = arith.addf %29, %34 : vector<8x1xf32>
    %c0_14 = arith.constant 0 : index
    %c0_15 = arith.constant 0 : index
    %36 = vector.load %arg8[%c0_14, %c0_15] : memref<8x1xf32, #tpu.memory_space<vmem>>, vector<8x1xf32>
    tpu.vector_store %arg8[%c0_14, %c0_15], %35 {strides = array<i32>} : memref<8x1xf32, #tpu.memory_space<vmem>>, vector<8x1xf32>,
    %c0_16 = arith.constant 0 : index
    %c0_17 = arith.constant 0 : index
    %37 = vector.load %arg7[%c0_16, %c0_17] : memref<8x1xf32, #tpu.memory_space<vmem>>, vector<8x1xf32>
    tpu.vector_store %arg7[%c0_16, %c0_17], %25 {strides = array<i32>} : memref<8x1xf32, #tpu.memory_space<vmem>>, vector<8x1xf32>,
    %c0_i32_18 = arith.constant 0 : i32
    %38 = arith.cmpi eq, %arg0, %c0_i32_18 : i32
    %39 = arith.extui %38 : i1 to i32
    %c0_i32_19 = arith.constant 0 : i32
    %40 = arith.cmpi ne, %39, %c0_i32_19 : i32
    scf.if %40 {
      %c0_20 = arith.constant 0 : index
      %c0_21 = arith.constant 0 : index
      %41 = vector.load %arg7[%c0_20, %c0_21] : memref<8x1xf32, #tpu.memory_space<vmem>>, vector<8x1xf32>
      %c0_22 = arith.constant 0 : index
      %c0_23 = arith.constant 0 : index
      %42 = vector.load %arg8[%c0_22, %c0_23] : memref<8x1xf32, #tpu.memory_space<vmem>>, vector<8x1xf32>
      %43 = math.log %42 : vector<8x1xf32>
      %44 = arith.addf %41, %43 : vector<8x1xf32>
      %c0_24 = arith.constant 0 : index
      %c0_25 = arith.constant 0 : index
      %45 = vector.load %arg6[%c0_24, %c0_25] : memref<8x1xf32, #tpu.memory_space<vmem>>, vector<8x1xf32>
      %46 = arith.subf %44, %45 : vector<8x1xf32>
      %47 = vector.shape_cast %46 : vector<8x1xf32> to vector<1x8x1xf32>
      %cst_26 = arith.constant dense<0.000000e+00> : vector<1xf32>
      %48 = vector.multi_reduction <add>, %47, %cst_26 [1, 2] : vector<1x8x1xf32> to vector<1xf32>
      %49 = vector.shape_cast %48 : vector<1xf32> to vector<1x1x1xf32>
      %50 = vector.extract %49[0, 0, 0] : f32 from vector<1x1x1xf32>
      %cst_27 = arith.constant 8.000000e+00 : f32
      %51 = arith.divf %50, %cst_27 : f32
      %c0_28 = arith.constant 0 : index
      %c0_29 = arith.constant 0 : index
      %52 = memref.load %arg4[%c0_28, %c0_29] : memref<1x1xf32, #tpu.memory_space<smem>>
      memref.store %51, %arg4[%c0_28, %c0_29] : memref<1x1xf32, #tpu.memory_space<smem>>
    } else {
    }
    return
  }
  func.func @transform_0(%arg0: i32) -> (i32, i32) {
    %c0_i32 = arith.constant 0 : i32
    %c0_i32_0 = arith.constant 0 : i32
    %c0_i32_1 = arith.constant 0 : i32
    return %c0_i32, %c0_i32_0 : i32, i32
  }
  func.func @transform_1(%arg0: i32) -> (i32, i32) {
    %c0_i32 = arith.constant 0 : i32
    %c0_i32_0 = arith.constant 0 : i32
    %c0_i32_1 = arith.constant 0 : i32
    return %c0_i32, %c0_i32_0 : i32, i32
  }
  func.func @transform_2(%arg0: i32) -> (i32, i32) {
    %c0_i32 = arith.constant 0 : i32
    %c0_i32_0 = arith.constant 0 : i32
    return %arg0, %c0_i32 : i32, i32
  }
  func.func @transform_3(%arg0: i32) -> (i32, i32) {
    %c0_i32 = arith.constant 0 : i32
    %c0_i32_0 = arith.constant 0 : i32
    %c0_i32_1 = arith.constant 0 : i32
    return %c0_i32, %c0_i32_0 : i32, i32
  }
}

</mosaic_0001>

<bundles_post_ra>
// kernel: tpu_custom_call.1
= control target key start
LH: loop header
LB: loop body
LE: loop exit
PB: predicated region body
PF: predicated region fallthrough
CT: control target
= control target key end

     0   :  { %8 = vsyncpa [#allocation7], 0  ;;  %s476_s0 = inlined_call_operand.hbm [shape: f32[8,32], index: 0, kind: input, shape index: {}]   ;;  %s477_s1 = inlined_call_operand.hbm [shape: f32[8,32], index: 1, kind: input, shape index: {}]   ;;  %s478_s2 = inlined_call_operand.hbm [shape: f32[16,32], index: 2, kind: input, shape index: {}]   ;;  %s479_s3 = inlined_call_operand.hbm [shape: f32[1,1], index: 3, kind: output, shape index: {}]  }
   0x1   :  { %9 = vsyncpa [#allocation10], 0 }
   0x2   :  { %10 = vsyncpa [#allocation8], 0  ;;  %s380_s12 = smov [#allocation9]   ;;  %s381_s14 = smov [#allocation6]  }
   0x3   :  { %s27_s13 = sshll.u32 %s380_s12, 4  ;;  %s17_s15 = sshll.u32 %s381_s14, 4  ;;  %s28_s13 = int_to_ptr.vmem [resolvable:$true] %s27_s13  ;;  %s18_s15 = int_to_ptr.vmem [resolvable:$true] %s17_s15 }
   0x4   :  { %s298_s18 = scalar_lea.hbm %s477_s1, 128 }
   0x5   :  { %p299_p0 = scmp.ne.s32.totalorder %s477_s1, %s298_s18  ;;  %p302_p1 = scmp.lt.u32.totalorder %s298_s18, %s477_s1 }
   0x7   :  { %p304_p2 = pnand %p302_p1, %p299_p0 }
   0x9   :  { %307 = shalt.err (!%p304_p2)
}
   0xa   :  { %s308_s23 = scalar_lea.vmem %s28_s13, 128  ;;  %p313_p4 = scmp.lt.s32.totalorder %s28_s13, %s28_s13 }
   0xb   :  { %p309_p3 = scmp.ne.s32.totalorder %s28_s13, %s308_s23  ;;  %p314_p5 = scmp.lt.s32.totalorder %s308_s23, %s308_s23 }
   0xd   :  { %p315_p6 = por %p314_p5, %p313_p4 }
   0xf   :  { %p316_p7 = pnand %p315_p6, %p309_p3 }
  0x11   :  { %319 = shalt.err (!%p316_p7)
}
  0x12   :  { %30 = dma.hbm_to_vmem [thread:$0]  %s477_s1, 128, %s28_s13, [#allocation10]  }
  0x13   :  { %s320_s28 = scalar_lea.hbm %s476_s0, 128 }
  0x14   :  { %p321_p8 = scmp.ne.s32.totalorder %s476_s0, %s320_s28  ;;  %p324_p9 = scmp.lt.u32.totalorder %s320_s28, %s476_s0 }
  0x16   :  { %p326_p10 = pnand %p324_p9, %p321_p8 }
  0x18   :  { %329 = shalt.err (!%p326_p10)
}
  0x19   :  { %s330_s6 = scalar_lea.vmem %s18_s15, 128  ;;  %p335_p12 = scmp.lt.s32.totalorder %s18_s15, %s18_s15 }
  0x1a   :  { %p331_p11 = scmp.ne.s32.totalorder %s18_s15, %s330_s6  ;;  %p336_p13 = scmp.lt.s32.totalorder %s330_s6, %s330_s6 }
  0x1c   :  { %p337_p0 = por %p336_p13, %p335_p12 }
  0x1e   :  { %p338_p1 = pnand %p337_p0, %p331_p11 }
  0x20   :  { %341 = shalt.err (!%p338_p1)
}
  0x21   :  { %20 = dma.hbm_to_vmem [thread:$0]  %s476_s0, 128, %s18_s15, [#allocation7]  }
  0x22   :  { %s382_s8 = smov [#allocation11]   ;;  %s342_s12 = scalar_lea.hbm %s478_s2, 256 }
  0x23   :  { %s36_s9 = sshll.u32 %s382_s8, 4  ;;  %p343_p2 = scmp.ne.s32.totalorder %s478_s2, %s342_s12  ;;  %s37_s9 = int_to_ptr.vmem [resolvable:$true] %s36_s9 }
  0x24   :  { %p346_p3 = scmp.lt.u32.totalorder %s342_s12, %s478_s2 }
  0x26   :  { %p348_p4 = pnand %p346_p3, %p343_p2 }
  0x28   :  { %351 = shalt.err (!%p348_p4)
}
  0x29   :  { %s352_s18 = scalar_lea.vmem %s37_s9, 256  ;;  %p357_p6 = scmp.lt.s32.totalorder %s37_s9, %s37_s9 }
  0x2a   :  { %p353_p5 = scmp.ne.s32.totalorder %s37_s9, %s352_s18  ;;  %p358_p7 = scmp.lt.s32.totalorder %s352_s18, %s352_s18 }
  0x2c   :  { %p359_p8 = por %p358_p7, %p357_p6 }
  0x2e   :  { %p360_p9 = pnand %p359_p8, %p353_p5 }
  0x30   :  { %363 = shalt.err (!%p360_p9)
}
  0x31   :  { %s383_s0 = smov 128   ;;  %s384_s15 = smov 8  }
  0x32   :  { %42 = dma.hbm_to_vmem [thread:$0]  %s478_s2, 256, %s37_s9, [#allocation10], %s383_s0, %s383_s0, %s384_s15  }
  0x33   :  { %374 = dma.done.wait [#allocation7], 128  }
  0x34   :  { %375 = vsyncadd [#allocation7], 4294967168 }
  0x35   :  { %376 = dma.done.wait [#allocation10], 384  }
  0x36   :  { %377 = vsyncadd [#allocation10], 4294966912  ;;  %vm59_vm0 = vcmask 261120   ;;  %v84_v0 = vld [vmem:[#allocation11 + $0x8] sm:$0xff]  ;;  %v56_v1 = vld [vmem:[#allocation6] sm:$0xff]  ;;  %v385_v12 = vmov 0.0|0.0   ;;  %v181_v36 = vlaneseq }
  0x37   :  { %v57_v2 = vld [vmem:[#allocation9] sm:$0xff]  ;;  %v86_v3 = vmul.f32 %v84_v0, %v84_v0  ;;  %v58_v4 = vmul.f32 %v56_v1, %v56_v1  ;;  %v83_v6 = vld [vmem:[#allocation11] sm:$0xff]  ;;  %266 = vmatprep.subr.bf16.mxu0 %v385_v12  ;;  %vm386_vm1 = vmmov 0   ;;  %v387_v13 = vmov 0.0   ;;  %vm268_vm2 = vmpackc.low %vm59_vm0, %vm59_vm0  ;;  %s364_s24 = scalar_lea.hbm %s479_s3, 16 }
  0x38   :  { %v66_v5 = vmul.f32 %v57_v2, %v57_v2  ;;  %v85_v7 = vmul.f32 %v83_v6, %v83_v6  ;;  %263 = vmatprep.mubr.msk.f32.mxu0 %vm386_vm1, %v387_v13  ;;  %vm79_vm3 = vcmask 7168   ;;  %v182_v37 = vand.u32 127, %v181_v36  ;;  %p365_p10 = scmp.ne.s32.totalorder %s479_s3, %s364_s24  ;;  %p368_p11 = scmp.lt.u32.totalorder %s364_s24, %s479_s3 }
  0x39   :  { %v91_v8 = vsel %vm59_vm0, %v86_v3, 0.0  ;;  %v60_v9 = vsel %vm59_vm0, %v58_v4, 0.0  ;;  %vm188_vm5 = vcmask 130048   ;;  %v388_v42 = vmov 0  }
  0x3a   :  { %92 = vadd.xlane.f32.xlu1 %v91_v8  ;;  %61 = vadd.xlane.f32.xlu0 %v60_v9  ;;  %v67_v10 = vsel %vm59_vm0, %v66_v5, 0.0  ;;  %v88_v11 = vsel %vm59_vm0, %v85_v7, 0.0  ;;  %vm185_vm4 = vcmp.lt.s32.totalorder %v182_v37, 16  ;;  %v389_v43 = vmov 1.0   ;;  %p370_p12 = pnand %p368_p11, %p365_p10 }
  0x3b   :  { %283 = vset.pattern.permute.xlu0 %v388_v42  ;;  %82 = vst.msk [vmem:[#allocation5] sm:$0xff] %vm79_vm3, %v389_v43 }
  0x3e   :  { %68 = vadd.xlane.f32.xlu1 %v67_v10  ;;  %89 = vadd.xlane.f32.xlu0 %v88_v11 }
  0x42   :  { %v196_v55 = vld [vmem:[#allocation5] sm:$0xff] }
  0xc7   :  { %v93_v14 = vpop.xlane.xlu1 %92  ;;  %v62_v15 = vpop.xlane.xlu0 %61 }
  0xc8   :  { %v95_v16 = vmax.f32 %v93_v14, 1e-24  ;;  %v63_v17 = vmax.f32 %v62_v15, 1e-24 }
  0xca   :  { %284 = vrsqrt.f32 %v95_v16 }
  0xcb   :  { %286 = vrsqrt.f32 %v63_v17  ;;  %v69_v18 = vpop.xlane.xlu1 %68  ;;  %v90_v19 = vpop.xlane.xlu0 %89 }
  0xcc   :  { %v70_v20 = vmax.f32 %v69_v18, 1e-24  ;;  %v94_v21 = vmax.f32 %v90_v19, 1e-24 }
  0xce   :  { %288 = vrsqrt.f32 %v70_v20 }
  0xcf   :  { %290 = vrsqrt.f32 %v94_v21 }
  0xd4   :  { %v285_v22 = vpop.eup %284 }
  0xd5   :  { %v287_v23 = vpop.eup %286  ;;  %v99_v26 = vmul.f32 %v285_v22, %v84_v0 }
  0xd6   :  { %v65_v24 = vmul.f32 %v287_v23, %v56_v1 }
  0xd8   :  { %v289_v25 = vpop.eup %288  ;;  %v73_v27 = vmul.f32 10.0, %v65_v24 }
  0xd9   :  { %v291_v28 = vpop.eup %290  ;;  %v72_v29 = vmul.f32 %v289_v25, %v57_v2 }
  0xda   :  { %v98_v30 = vmul.f32 %v291_v28, %v83_v6  ;;  %78 = vst.msk [vmem:[#allocation2] sm:$0xff] %vm59_vm0, %v73_v27 }
  0xdb   :  { %v74_v31 = vmul.f32 %v73_v27, %v72_v29 }
  0xdc   :  { %v267_v32 = vpack.c.bf16 %v99_v26, %v98_v30 }
  0xdd   :  { %v75_v33 = vsel %vm59_vm0, %v74_v31, 0.0 }
  0xde   :  { %269 = vmatpush3.bf16.xpose.msk.msra.mxu0 %vm268_vm2, %v267_v32  ;;  %76 = vadd.xlane.f32.xlu0 %v75_v33 }
  0xe1   :  { %v100_v34 = vld [vmem:[#allocation2] sm:$0xff] }
  0xe5   :  { %264 = vmatmul.mubr.msk.f32.vlgmr.msra.gmra.mrb[0].mxu0 %vm59_vm0, %v100_v34 }
 0x16b   :  { %v77_v35 = vpop.xlane.xlu0 %76 }
 0x16c   :  { %80 = vst.msk [vmem:[#allocation3] sm:$0xff] %vm79_vm3, %v77_v35  ;;  %81 = vst.msk [vmem:[#allocation4] sm:$0xff] %vm79_vm3, %v77_v35 }
 0x173   :  { %v187_v45 = vld [vmem:[#allocation4] sm:$0xff]  ;;  %v221_v0 = vld [vmem:[#allocation3] sm:$0xff] }
 0x1b8   :  { %v176_v38 = vpop.f32.mrb[0].mxu0 }
 0x1b9   :  { %v186_v39 = vsel %vm185_vm4, %v176_v38, -inf  ;;  %v265_v40 = vpop.f32.mrb[1].mxu0 }
 0x1ba   :  { %v189_v41 = vsel %vm188_vm5, %v186_v39, -inf }
 0x1bb   :  { %190 = vmax.xlane.f32.xlu1 %v189_v41 }
 0x248   :  { %v191_v44 = vpop.xlane.xlu1 %190 }
 0x249   :  { %v192_v46 = vmax.f32 %v187_v45, %v191_v44 }
 0x24b   :  { %v193_v47 = vsub.f32 %v187_v45, %v192_v46  ;;  %212 = vst.msk [vmem:[#allocation4] sm:$0xff] %vm79_vm3, %v192_v46  ;;  %200 = vperm.xlu0 %283, %v192_v46  }
 0x24d   :  { %v194_v53 = vmul.f32 1.442695, %v193_v47 }
 0x252   :  { %v216_v62 = vld [vmem:[#allocation4] sm:$0xff] }
 0x2ca   :  { %v201_v48 = vpop.permute.xlu0 %200 }
 0x2cb   :  { %v203_v49 = vsub.f32 %v186_v39, %v201_v48 }
 0x2cd   :  { %v204_v50 = vmul.f32 1.442695, %v203_v49 }
 0x2cf   :  { %292 = vpow2.f32 %v204_v50 }
 0x2d0   :  { %294 = vpow2.f32 %v194_v53 }
 0x2d9   :  { %v293_v51 = vpop.eup %292 }
 0x2da   :  { %v206_v52 = vsel %vm188_vm5, %v293_v51, 0.0  ;;  %v295_v54 = vpop.eup %294 }
 0x2db   :  { %207 = vadd.xlane.f32.xlu1 %v206_v52  ;;  %v197_v56 = vmul.f32 %v295_v54, %v196_v55 }
 0x368   :  { %v208_v57 = vpop.xlane.xlu1 %207 }
 0x369   :  { %v209_v58 = vadd.f32 %v208_v57, %v197_v56 }
 0x36b   :  { %211 = vst.msk [vmem:[#allocation5] sm:$0xff] %vm79_vm3, %v209_v58 }
 0x372   :  { %v217_v59 = vld [vmem:[#allocation5] sm:$0xff] }
 0x373   :  { %296 = vlog2.f32 %v217_v59 }
 0x37d   :  { %v297_v60 = vpop.eup %296 }
 0x37e   :  { %v219_v61 = vmul.f32 0.6931472, %v297_v60 }
 0x380   :  { %v220_v63 = vadd.f32 %v219_v61, %v216_v62 }
 0x382   :  { %v222_v1 = vsub.f32 %v220_v63, %v221_v0 }
 0x384   :  { %v223_v2 = vsel %vm79_vm3, %v222_v1, 0.0 }
 0x385   :  { %224 = vadd.xlane.f32.xlu1 %v223_v2 }
 0x412   :  { %v225_v3 = vpop.xlane.xlu1 %224 }
 0x413   :  { %v226_v4 = vrot.slane %v225_v3, 4 }
 0x415   :  { %v227_v5 = vadd.f32 %v226_v4, %v225_v3 }
 0x417   :  { %v228_v6 = vrot.slane %v227_v5, 2 }
 0x419   :  { %v229_v7 = vadd.f32 %v228_v6, %v227_v5 }
 0x41b   :  { %v230_v8 = vrot.slane %v229_v7, 1 }
 0x41d   :  { %v231_v9 = vadd.f32 %v230_v8, %v229_v7 }
 0x41f   :  { %270 = vpush %v231_v9 }
 0x450   :  { %s271_s2 = spop %270 }
 0x451   :  { %s235_s21 = smul.f32 0.125, %s271_s2 }
 0x453   :  { %237 = sst [smem:[#allocation12]] %s235_s21 }
 0x454   :  { %373 = shalt.err (!%p370_p12)
}
 0x455   :  { %s390_s29 = smov [#allocation12]  }
 0x456   :  { %245 = dma.smem_to_hbm %s390_s29, 16, %s479_s3, [#allocation8]  }
 0x457   :  { %378 = dma.done.wait [#allocation8], 16  }
 0x458   :  { %379 = vsyncadd [#allocation8], 4294967280 }
 0x459   :  { %249 = sfence }
 0x45a   :  { %250 = vsyncpa [#allocation7], 1 }
 0x45b   :  { %251 = vsyncpa [#allocation10], 1 }
 0x45c   :  { %252 = vsyncpa [#allocation8], 1 }

</bundles_post_ra>
